<compile_context>
chip_gen: v7x
topology: tpu7x:2x2x1
jax: 0.10.0
libtpu: 0.0.40
codegen_flags: <defaults>
</compile_context>

<pallas_src>
import functools

import jax
import jax.numpy as jnp
from jax.experimental import pallas as pl
from jax.experimental.pallas import tpu as pltpu

_LANES = 128


def _smooth_l1_kernel(x_ref, t_ref, o_ref, *, beta, half_over_beta):
    """Shared body for both layouts.

    rank-3 refs: x/t = (C, tr, 128), o = (tr, 128)  -> per-channel accumulation
    rank-2 refs: x/t = (C, TL),      o = (1, TL)    -> sublane reduce over C
    """
    c_dim = x_ref.shape[0]
    if len(x_ref.shape) == 3:
        # Per-channel accumulation over dense (tr, 128) tiles: full vreg
        # density, peak live intermediates ~3 * tr*128*4 B (not ~3*C*...).
        d0 = x_ref[0].astype(jnp.float32) - t_ref[0].astype(jnp.float32)
        sq = d0 * d0
        for c in range(1, c_dim):
            dc = x_ref[c].astype(jnp.float32) - t_ref[c].astype(jnp.float32)
            sq = sq + dc * dc                      # (tr, 128)
    else:
        # (C, TL) tile; channel axis lives on sublanes -> one XLU reduce.
        d = x_ref[...].astype(jnp.float32) - t_ref[...].astype(jnp.float32)
        sq = jnp.sum(d * d, axis=0, keepdims=True)  # (1, TL)

    diff = jnp.sqrt(sq)                             # ||x - t||_2 per pixel
    loss = jnp.where(diff < beta, half_over_beta * sq, diff - 0.5 * beta)
    o_ref[...] = loss.astype(o_ref.dtype)


def _choose_row_tile(num_rows, channels, itemsize, n_batch):
    """Aligned path: row tile (multiple of 8 or full dim), ~2 MiB per block,
    with a grid-size floor so the total grid keeps >= ~8 steps."""
    if num_rows <= 8:
        return num_rows                              # full dim -> always legal
    target_bytes = 2 << 20
    cap = max(8, target_bytes // (channels * _LANES * itemsize))
    tr = max(8, (min(num_rows, cap) // 8) * 8)
    min_steps = 8
    while tr > 8 and n_batch * pl.cdiv(num_rows, tr) < min_steps:
        tr = max(8, ((tr // 2) // 8) * 8)
    return tr


def _choose_lane_tile(hw, channels, n_batch):
    """Unaligned path: lane tile (multiple of 128).  Bound C*TL to ~512K
    elements so the f32 full-tile intermediates stay ~2 MiB each."""
    lane_ext = pl.cdiv(hw, _LANES) * _LANES
    max_elems = (2 << 20) // 4
    tl = max(_LANES, ((max_elems // channels) // _LANES) * _LANES)
    tl = min(tl, lane_ext)
    min_steps = 8
    while tl > _LANES and n_batch * pl.cdiv(lane_ext, tl) < min_steps:
        tl = max(_LANES, ((tl // 2) // _LANES) * _LANES)
    return tl


def smooth_l1_loss(x, target, beta=1.0):
    """x, target: (N, C, H, W). Returns elementwise loss (N, H, W) in the
    inputs' (promoted) dtype; internal math is float32.

    Note: beta <= 0 degenerates to pure L1 (diff - 0.5*beta), matching the
    PyTorch module's where() semantics.
    """
    assert x.shape == target.shape
    N, C, H, W = x.shape
    HW = H * W

    beta = float(beta)
    half_over_beta = 0.5 / beta if beta > 0.0 else 0.0
    out_dtype = jnp.result_type(x.dtype, target.dtype)
    itemsize = max(jnp.dtype(x.dtype).itemsize, jnp.dtype(target.dtype).itemsize)

    kernel = functools.partial(
        _smooth_l1_kernel, beta=beta, half_over_beta=half_over_beta)
    compiler_params = pltpu.CompilerParams(
        dimension_semantics=("parallel", "parallel"),
        vmem_limit_bytes=32 * 1024 * 1024,
    )

    if HW % _LANES == 0:
        # ---- Aligned path: free reshape, dense (tr, 128) blocks. ----
        R = HW // _LANES
        x4 = x.reshape(N, C, R, _LANES)
        t4 = target.reshape(N, C, R, _LANES)
        tr = _choose_row_tile(R, C, itemsize, N)
        grid = (N, pl.cdiv(R, tr))

        out = pl.pallas_call(
            kernel,
            out_shape=jax.ShapeDtypeStruct((N, R, _LANES), out_dtype),
            grid_spec=pltpu.PrefetchScalarGridSpec(
                num_scalar_prefetch=0,
                grid=grid,
                in_specs=[
                    pl.BlockSpec((pl.Squeezed(), C, tr, _LANES),
                                 lambda n, r: (n, 0, r, 0)),
                    pl.BlockSpec((pl.Squeezed(), C, tr, _LANES),
                                 lambda n, r: (n, 0, r, 0)),
                ],
                out_specs=pl.BlockSpec((pl.Squeezed(), tr, _LANES),
                                       lambda n, r: (n, r, 0)),
            ),
            compiler_params=compiler_params,
        )(x4, t4)
        return out.reshape(N, H, W)

    # ---- Unaligned path: no pad, no output slice; ragged lane tail is
    # handled by the cdiv grid (OOB lanes are never written back). ----
    x3 = x.reshape(N, C, HW)
    t3 = target.reshape(N, C, HW)
    tl = _choose_lane_tile(HW, C, N)
    grid = (N, pl.cdiv(HW, tl))

    out = pl.pallas_call(
        kernel,
        out_shape=jax.ShapeDtypeStruct((N, 1, HW), out_dtype),
        grid_spec=pltpu.PrefetchScalarGridSpec(
            num_scalar_prefetch=0,
            grid=grid,
            in_specs=[
                pl.BlockSpec((pl.Squeezed(), C, tl), lambda n, r: (n, 0, r)),
                pl.BlockSpec((pl.Squeezed(), C, tl), lambda n, r: (n, 0, r)),
            ],
            out_specs=pl.BlockSpec((pl.Squeezed(), 1, tl),
                                   lambda n, r: (n, 0, r)),
        ),
        compiler_params=compiler_params,
    )(x3, t3)
    return out.reshape(N, H, W)


def smooth_l1_loss_ref(x, target, beta=1.0):
    diff = jnp.linalg.norm(
        x.astype(jnp.float32) - target.astype(jnp.float32), axis=1)
    if beta > 0.0:
        return jnp.where(diff < beta, 0.5 * diff**2 / beta, diff - 0.5 * beta)
    return diff - 0.5 * beta


if __name__ == "__main__":
    key = jax.random.PRNGKey(0)
    k1, k2, k3, k4 = jax.random.split(key, 4)

    # Aligned path (H*W % 128 == 0).
    N, C, H, W = 2, 4, 16, 16
    x = jax.random.normal(k1, (N, C, H, W), dtype=jnp.float32)
    t = jax.random.normal(k2, (N, C, H, W), dtype=jnp.float32)
    out = jax.block_until_ready(smooth_l1_loss(x, t, beta=1.0))
    ref = smooth_l1_loss_ref(x, t, beta=1.0)
    assert out.shape == (N, H, W), out.shape
    assert jnp.allclose(out.astype(jnp.float32), ref, atol=1e-5, rtol=1e-5), (
        float(jnp.max(jnp.abs(out.astype(jnp.float32) - ref))))

    # Unaligned path (H*W % 128 != 0): exercises the pad-free ragged-tail path.
    N2, C2, H2, W2 = 2, 3, 9, 9
    x2 = jax.random.normal(k3, (N2, C2, H2, W2), dtype=jnp.float32)
    t2 = jax.random.normal(k4, (N2, C2, H2, W2), dtype=jnp.float32)
    out2 = jax.block_until_ready(smooth_l1_loss(x2, t2, beta=0.5))
    ref2 = smooth_l1_loss_ref(x2, t2, beta=0.5)
    assert out2.shape == (N2, H2, W2), out2.shape
    assert jnp.allclose(out2.astype(jnp.float32), ref2, atol=1e-5, rtol=1e-5), (
        float(jnp.max(jnp.abs(out2.astype(jnp.float32) - ref2))))

    print("KERNEL_OK")
</pallas_src>

<mosaic_0001>
module attributes {stable_mosaic.version = 11 : i64} {
  func.func @_smooth_l1_kernel(%arg0: i32, %arg1: i32, %arg2: memref<1x4x2x128xf32, #tpu.memory_space<vmem>>, %arg3: memref<1x4x2x128xf32, #tpu.memory_space<vmem>>, %arg4: memref<1x2x128xf32, #tpu.memory_space<vmem>>) attributes {dimension_semantics = [#tpu.dimension_semantics<parallel>, #tpu.dimension_semantics<parallel>], iteration_bounds = array<i64: 2, 1>, scalar_prefetch = 0 : i64, scratch_operands = 0 : i64, tpu.core_type = #tpu.core_type<tc>, window_params = [{transform_indices = @transform_0, window_bounds = array<i64: 1, 4, 2, 128>}, {transform_indices = @transform_1, window_bounds = array<i64: 1, 4, 2, 128>}, {transform_indices = @transform_2, window_bounds = array<i64: 1, 2, 128>}]} {
    %c0 = arith.constant 0 : index
    %c0_0 = arith.constant 0 : index
    %c0_1 = arith.constant 0 : index
    %c0_2 = arith.constant 0 : index
    %0 = vector.load %arg2[%c0, %c0_0, %c0_1, %c0_2] : memref<1x4x2x128xf32, #tpu.memory_space<vmem>>, vector<1x1x2x128xf32>
    %1 = vector.shape_cast %0 : vector<1x1x2x128xf32> to vector<2x128xf32>
    %c0_3 = arith.constant 0 : index
    %c0_4 = arith.constant 0 : index
    %c0_5 = arith.constant 0 : index
    %c0_6 = arith.constant 0 : index
    %2 = vector.load %arg3[%c0_3, %c0_4, %c0_5, %c0_6] : memref<1x4x2x128xf32, #tpu.memory_space<vmem>>, vector<1x1x2x128xf32>
    %3 = vector.shape_cast %2 : vector<1x1x2x128xf32> to vector<2x128xf32>
    %4 = arith.subf %1, %3 : vector<2x128xf32>
    %5 = arith.mulf %4, %4 : vector<2x128xf32>
    %c0_7 = arith.constant 0 : index
    %c1 = arith.constant 1 : index
    %c0_8 = arith.constant 0 : index
    %c0_9 = arith.constant 0 : index
    %6 = vector.load %arg2[%c0_7, %c1, %c0_8, %c0_9] : memref<1x4x2x128xf32, #tpu.memory_space<vmem>>, vector<1x1x2x128xf32>
    %7 = vector.shape_cast %6 : vector<1x1x2x128xf32> to vector<2x128xf32>
    %c0_10 = arith.constant 0 : index
    %c1_11 = arith.constant 1 : index
    %c0_12 = arith.constant 0 : index
    %c0_13 = arith.constant 0 : index
    %8 = vector.load %arg3[%c0_10, %c1_11, %c0_12, %c0_13] : memref<1x4x2x128xf32, #tpu.memory_space<vmem>>, vector<1x1x2x128xf32>
    %9 = vector.shape_cast %8 : vector<1x1x2x128xf32> to vector<2x128xf32>
    %10 = arith.subf %7, %9 : vector<2x128xf32>
    %11 = arith.mulf %10, %10 : vector<2x128xf32>
    %12 = arith.addf %5, %11 : vector<2x128xf32>
    %c0_14 = arith.constant 0 : index
    %c2 = arith.constant 2 : index
    %c0_15 = arith.constant 0 : index
    %c0_16 = arith.constant 0 : index
    %13 = vector.load %arg2[%c0_14, %c2, %c0_15, %c0_16] : memref<1x4x2x128xf32, #tpu.memory_space<vmem>>, vector<1x1x2x128xf32>
    %14 = vector.shape_cast %13 : vector<1x1x2x128xf32> to vector<2x128xf32>
    %c0_17 = arith.constant 0 : index
    %c2_18 = arith.constant 2 : index
    %c0_19 = arith.constant 0 : index
    %c0_20 = arith.constant 0 : index
    %15 = vector.load %arg3[%c0_17, %c2_18, %c0_19, %c0_20] : memref<1x4x2x128xf32, #tpu.memory_space<vmem>>, vector<1x1x2x128xf32>
    %16 = vector.shape_cast %15 : vector<1x1x2x128xf32> to vector<2x128xf32>
    %17 = arith.subf %14, %16 : vector<2x128xf32>
    %18 = arith.mulf %17, %17 : vector<2x128xf32>
    %19 = arith.addf %12, %18 : vector<2x128xf32>
    %c0_21 = arith.constant 0 : index
    %c3 = arith.constant 3 : index
    %c0_22 = arith.constant 0 : index
    %c0_23 = arith.constant 0 : index
    %20 = vector.load %arg2[%c0_21, %c3, %c0_22, %c0_23] : memref<1x4x2x128xf32, #tpu.memory_space<vmem>>, vector<1x1x2x128xf32>
    %21 = vector.shape_cast %20 : vector<1x1x2x128xf32> to vector<2x128xf32>
    %c0_24 = arith.constant 0 : index
    %c3_25 = arith.constant 3 : index
    %c0_26 = arith.constant 0 : index
    %c0_27 = arith.constant 0 : index
    %22 = vector.load %arg3[%c0_24, %c3_25, %c0_26, %c0_27] : memref<1x4x2x128xf32, #tpu.memory_space<vmem>>, vector<1x1x2x128xf32>
    %23 = vector.shape_cast %22 : vector<1x1x2x128xf32> to vector<2x128xf32>
    %24 = arith.subf %21, %23 : vector<2x128xf32>
    %25 = arith.mulf %24, %24 : vector<2x128xf32>
    %26 = arith.addf %19, %25 : vector<2x128xf32>
    %27 = math.sqrt %26 : vector<2x128xf32>
    %cst = arith.constant 1.000000e+00 : f32
    %28 = vector.broadcast %cst : f32 to vector<2x128xf32>
    %29 = arith.cmpf olt, %27, %28 : vector<2x128xf32>
    %cst_28 = arith.constant 5.000000e-01 : f32
    %30 = vector.broadcast %cst_28 : f32 to vector<2x128xf32>
    %31 = arith.mulf %30, %26 : vector<2x128xf32>
    %cst_29 = arith.constant 5.000000e-01 : f32
    %32 = vector.broadcast %cst_29 : f32 to vector<2x128xf32>
    %33 = arith.subf %27, %32 : vector<2x128xf32>
    %34 = arith.select %29, %31, %33 : vector<2x128xi1>, vector<2x128xf32>
    %c0_30 = arith.constant 0 : index
    %c0_31 = arith.constant 0 : index
    %c0_32 = arith.constant 0 : index
    %35 = vector.load %arg4[%c0_30, %c0_31, %c0_32] : memref<1x2x128xf32, #tpu.memory_space<vmem>>, vector<1x2x128xf32>
    %36 = vector.shape_cast %35 : vector<1x2x128xf32> to vector<2x128xf32>
    %37 = vector.shape_cast %34 : vector<2x128xf32> to vector<1x2x128xf32>
    tpu.vector_store %arg4[%c0_30, %c0_31, %c0_32], %37 {strides = array<i32>} : memref<1x2x128xf32, #tpu.memory_space<vmem>>, vector<1x2x128xf32>,
    return
  }
  func.func @transform_0(%arg0: i32, %arg1: i32) -> (i32, i32, i32, i32) {
    %c0_i32 = arith.constant 0 : i32
    %c0_i32_0 = arith.constant 0 : i32
    %c0_i32_1 = arith.constant 0 : i32
    return %arg0, %c0_i32, %arg1, %c0_i32_0 : i32, i32, i32, i32
  }
  func.func @transform_1(%arg0: i32, %arg1: i32) -> (i32, i32, i32, i32) {
    %c0_i32 = arith.constant 0 : i32
    %c0_i32_0 = arith.constant 0 : i32
    %c0_i32_1 = arith.constant 0 : i32
    return %arg0, %c0_i32, %arg1, %c0_i32_0 : i32, i32, i32, i32
  }
  func.func @transform_2(%arg0: i32, %arg1: i32) -> (i32, i32, i32) {
    %c0_i32 = arith.constant 0 : i32
    %c0_i32_0 = arith.constant 0 : i32
    return %arg0, %arg1, %c0_i32 : i32, i32, i32
  }
}

</mosaic_0001>

<bundles_post_ra>
// kernel: tpu_custom_call.1
= control target key start
LH: loop header
LB: loop body
LE: loop exit
PB: predicated region body
PF: predicated region fallthrough
CT: control target
= control target key end

     0   :  { %7 = vsyncpa [#allocation3], 0  ;;  %s881_s0 = inlined_call_operand.hbm [shape: f32[2,4,2,128], index: 0, kind: input, shape index: {}]   ;;  %s882_s1 = inlined_call_operand.hbm [shape: f32[2,4,2,128], index: 1, kind: input, shape index: {}]   ;;  %s883_s2 = inlined_call_operand.hbm [shape: f32[2,2,128], index: 2, kind: output, shape index: {}]  }
   0x1   :  { %9 = vsyncpa [#allocation3 + $0x1], 0 }
   0x2   :  { %10 = vsyncpa [#allocation6], 0 }
   0x3   :  { %12 = vsyncpa [#allocation6 + $0x1], 0 }
   0x4   :  { %13 = vsyncpa [#allocation4], 0 }
   0x5   :  { %15 = vsyncpa [#allocation4 + $0x1], 0  ;;  %s646_s9 = smov 0   ;;  %s648_s10 = smov 0  }
   0x6   :  { %s650_s11 = smov 0   ;;  %s652_s12 = smov 0  }
   0x7   :  { %s654_s13 = smov 0   ;;  %s656_s14 = smov 0  }
   0x8 LB: > { %s380_s15 = sadd.s32 4294967295, %s624_s14   ;;  %s381_s16 = sadd.s32 4294967294, %s624_s14   ;;  %s624_s14 = sphi %s656_s14, %s21_s14   ;;  %s620_s13 = sphi %s654_s13, %s901_s13   ;;  %s616_s12 = sphi %s652_s12, %s900_s12   ;;  %s612_s11 = sphi %s650_s11, %s899_s11   ;;  %s608_s10 = sphi %s648_s10, %s898_s10   ;;  %s604_s9 = sphi %s646_s9, %s897_s9  }
   0x9   : > { %s33_s17 = sadd.s32 1, %s620_s13  ;;  %s42_s18 = sadd.s32 1, %s612_s11 }
   0xa   : > { %p35_p0 = scmp.ge.s32.totalorder %s33_s17, 2  ;;  %p49_p1 = scmp.ne.s32.totalorder %s612_s11, %s608_s10 }
   0xb   : > { %p50_p2 = scmp.eq.s32.totalorder %s624_s14, 0  ;;  %p55_p3 = scmp.ne.s32.totalorder %s608_s10, %s604_s9 }
   0xc   : > { %s903_s17 = smov (%p35_p0, %s33_s17), 0  ;;  %p56_p5 = scmp.eq.s32.totalorder %s380_s15, 0 }
   0xd   : > { %p687_p4 = por %p50_p2, %p49_p1  ;;  %s37_s20 = ssub.s32 %s620_s13, %s903_s17 }
   0xe   : > { %p109_p6 = scmp.eq.s32.totalorder %s380_s15, 1  ;;  %p40_p7 = scmp.eq.s32.totalorder %s37_s20, 0 }
   0xf   : > { %p693_p8 = por %p56_p5, %p55_p3  ;;  %p115_p10 = scmp.eq.s32.totalorder %s381_s16, 1 }
  0x10   : > { %p697_p9 = por %p109_p6, %p49_p1  ;;  %p424_p13 = scmp.lt.s32.totalorder %s624_s14, 2 }
  0x11   : > { %s887_s21 = scalar_select %p693_p8, 1, 0 }
  0x12   : > { %s888_s22 = scalar_select %p697_p9, 1, 0 }
  0x13   : > { %s702_s23 = scalar_select %p40_p7, %s612_s11, %s42_s18  }
  0x14   : > { %p704_p11 = por %p115_p10, %p55_p3  ;;  %s711_s25 = sand.u32 1, %s612_s11  }
  0x15   : > { %s384_s26 = sshll.u32 %s711_s25, 3  ;;  %s405_s27 = sshll.u32 %s620_s13, 7 }
  0x16   : > { %s889_s24 = scalar_select %p704_p11, 1, 0 }
  0x17   : > { %s720_s30 = scalar_lea.hbm %s881_s0, %s405_s27  ;;  %s139_s3 = scalar_lea.vmem [#allocation2], %s384_s26 }
  0x18   : > { %s147_s4 = sshll.u32 %s139_s3, 4  ;;  %p728_p0 = pnand %p424_p13, %p687_p4  ;;  %s724_s4 = int_to_ptr.vmem [resolvable:$true] %s147_s4 }
  0x19   : > { %s136_s6 = scalar_lea.sflag [#allocation3], %s711_s25  ;;  %s478_s7 = scalar_lea.hbm %s720_s30, 128 }
  0x1a   : > { %p479_p2 = scmp.ne.s32.totalorder %s720_s30, %s478_s7  ;;  %p480_p3 = pneg %p728_p0 }
  0x1b   : > { %s483_s16 = scalar_lea.hbm %s881_s0, 256  ;;  %p484_p4 = scmp.lt.u32.totalorder %s720_s30, %s881_s0 }
  0x1c   : > { %p481_p5 = pnand %p480_p3, %p479_p2  ;;  %p485_p7 = scmp.lt.u32.totalorder %s483_s16, %s478_s7 }
  0x1d   : > { %p487_p13 = scmp.lt.u32.totalorder %s478_s7, %s720_s30 }
  0x1e   : > { %p482_p6 = pneg %p481_p5  ;;  %p486_p10 = por %p485_p7, %p484_p4 }
  0x20   : > { %p488_p12 = por %p487_p13, %p486_p10 }
  0x22   : > { %p489_p1 = pnand %p488_p12, %p482_p6 }
  0x24   : > { %492 = shalt.err (!%p489_p1)
}
  0x25   : > { %s493_s20 = scalar_lea.vmem %s724_s4, 128  ;;  %s626_s28 = smov [#allocation2]  }
  0x26   : > { %p494_p2 = scmp.ne.s32.totalorder %s724_s4, %s493_s20  ;;  %s498_s29 = sshll.u32 %s626_s28, 4  ;;  %s499_s29 = int_to_ptr.vmem [resolvable:$false] %s498_s29 }
  0x27   : > { %s500_s3 = scalar_lea.vmem %s499_s29, 256  ;;  %p501_p9 = scmp.lt.s32.totalorder %s724_s4, %s499_s29 }
  0x28   : > { %p496_p5 = pnand %p494_p2, %p480_p3  ;;  %p502_p4 = scmp.lt.s32.totalorder %s500_s3, %s493_s20 }
  0x2a   : > { %p497_p11 = pneg %p496_p5  ;;  %p503_p7 = por %p502_p4, %p501_p9 }
  0x2c   : > { %p504_p10 = pnand %p503_p7, %p497_p11 }
  0x2e   : > { %507 = shalt.err (!%p504_p10)
}
  0x2f   : > { %s627_s7 = smov 32   ;;  %s628_s8 = smov 2  }
  0x30   : > { %416 = dma.hbm_to_vmem [thread:$0]  (!%p728_p0), %s720_s30, 128, %s724_s4, %s136_s6, %s627_s7, %s627_s7, %s628_s8  }
  0x31   : > { %p177_p9 = scmp.lt.s32.totalorder %s624_s14, 3  ;;  %s770_s18 = scalar_lea.hbm %s882_s1, %s405_s27 }
  0x32   : > { %p891_p11 = scmp.ge.s32.totalorder %s624_s14, 1  ;;  %s161_s20 = scalar_lea.vmem [#allocation5], %s384_s26 }
  0x33   : > { %s169_s28 = sshll.u32 %s161_s20, 4  ;;  %s158_s30 = scalar_lea.sflag [#allocation6], %s711_s25  ;;  %s780_s28 = int_to_ptr.vmem [resolvable:$true] %s169_s28 }
  0x34   : > { %p774_p12 = pnand %p891_p11, %p177_p9  ;;  %s508_s4 = scalar_lea.hbm %s770_s18, 128 }
  0x35   : > { %p509_p1 = scmp.ne.s32.totalorder %s770_s18, %s508_s4  ;;  %s513_s29 = scalar_lea.hbm %s882_s1, 256 }
  0x36   : > { %p514_p2 = scmp.lt.u32.totalorder %s770_s18, %s882_s1  ;;  %p515_p5 = scmp.lt.u32.totalorder %s513_s29, %s508_s4 }
  0x37   : > { %p511_p6 = pnand %p509_p1, %p480_p3  ;;  %p517_p7 = scmp.lt.u32.totalorder %s508_s4, %s770_s18 }
  0x38   : > { %p516_p4 = por %p515_p5, %p514_p2 }
  0x39   : > { %p512_p13 = pneg %p511_p6 }
  0x3a   : > { %p518_p10 = por %p517_p7, %p516_p4 }
  0x3c   : > { %p519_p9 = pnand %p518_p10, %p512_p13 }
  0x3e   : > { %522 = shalt.err (!%p519_p9)
}
  0x3f   : > { %s523_s26 = scalar_lea.vmem %s780_s28, 128  ;;  %s629_s16 = smov [#allocation5]  }
  0x40   : > { %p524_p11 = scmp.ne.s32.totalorder %s780_s28, %s523_s26  ;;  %s528_s20 = sshll.u32 %s629_s16, 4  ;;  %s529_s20 = int_to_ptr.vmem [resolvable:$false] %s528_s20 }
  0x41   : > { %s530_s27 = scalar_lea.vmem %s529_s20, 256  ;;  %p531_p8 = scmp.lt.s32.totalorder %s780_s28, %s529_s20 }
  0x42   : > { %p526_p1 = pnand %p524_p11, %p480_p3  ;;  %p532_p2 = scmp.lt.s32.totalorder %s530_s27, %s523_s26 }
  0x44   : > { %p527_p6 = pneg %p526_p1  ;;  %p533_p5 = por %p532_p2, %p531_p8 }
  0x46   : > { %p534_p4 = pnand %p533_p5, %p527_p6 }
  0x48   : > { %537 = shalt.err (!%p534_p4)
}
  0x49   : > { %419 = dma.hbm_to_vmem [thread:$0]  (!%p728_p0), %s770_s18, 128, %s780_s28, %s158_s30, %s627_s7, %s627_s7, %s628_s8  }
  0x4a   : > { %181 = sbr.rel (%p774_p12) target bundleno = 128 (0x80), region = 28  ;;  %s814_s4 = sand.u32 (!%p774_p12), 1, %s608_s10  }
  0x4b   : > { %s391_s6 = sshll.u32 (!%p774_p12), %s814_s4, 3  ;;  %s184_s29 = scalar_lea.sflag (!%p774_p12), [#allocation3], %s814_s4 }
  0x4c   : > { %s187_s5 = scalar_lea.vmem (!%p774_p12), [#allocation2], %s391_s6  ;;  %p893_p8 = scmp.ne.s32.totalorder (!%p774_p12), %s887_s21, 0 }
  0x51   : > { %591 = dma.done.wait (%p893_p8), %s184_s29, 128  }
  0x52   : > { %593 = vsyncadd (%p893_p8), %s184_s29, 4294967168  ;;  %s193_s25 = scalar_lea.sflag [#allocation6], %s814_s4  ;;  %s196_s7 = scalar_lea.vmem [#allocation5], %s391_s6 }
  0x53   : > { %595 = dma.done.wait (%p893_p8), %s193_s25, 128  }
  0x54   : > { %597 = vsyncadd (%p893_p8), %s193_s25, 4294967168  ;;  %v222_v0 = vld [vmem:[%s187_s5] sm:$0x3]  ;;  %v223_v1 = vld [vmem:[%s196_s7] sm:$0x3]  ;;  %s393_s21 = sshll.u32 %s814_s4, 1 }
  0x55   : > { %v394_v2 = vld [vmem:[%s187_s5 + $0x2] sm:$0x3]  ;;  %v224_v3 = vsub.f32 %v222_v0, %v223_v1  ;;  %v395_v4 = vld [vmem:[%s196_s7 + $0x2] sm:$0x3]  ;;  %v396_v5 = vld [vmem:[%s187_s5 + $0x4] sm:$0x3] }
  0x56   : > { %v397_v6 = vld [vmem:[%s196_s7 + $0x4] sm:$0x3]  ;;  %v230_v7 = vsub.f32 %v394_v2, %v395_v4  ;;  %v398_v9 = vld [vmem:[%s187_s5 + $0x6] sm:$0x3]  ;;  %v399_v10 = vld [vmem:[%s196_s7 + $0x6] sm:$0x3] }
  0x57   : > { %v237_v8 = vsub.f32 %v396_v5, %v397_v6  ;;  %v225_v11 = vmul.f32 %v224_v3, %v224_v3  ;;  %v244_v12 = vsub.f32 %v398_v9, %v399_v10  ;;  %s221_s8 = scalar_lea.vmem [#allocation7], %s393_s21  ;;  %s402_s19 = sshll.u32 %s616_s12, 5 }
  0x58   : > { %v231_v13 = vmul.f32 %v230_v7, %v230_v7  ;;  %s274_s18 = sshll.u32 %s221_s8, 4  ;;  %s834_s3 = scalar_lea.hbm %s883_s2, %s402_s19  ;;  %s829_s18 = int_to_ptr.vmem [resolvable:$true] %s274_s18 }
  0x59   : > { %v238_v14 = vmul.f32 %v237_v8, %v237_v8  ;;  %v245_v16 = vmul.f32 %v244_v12, %v244_v12  ;;  %s260_s15 = scalar_lea.sflag [#allocation4], %s814_s4  ;;  %s538_s26 = scalar_lea.vmem %s829_s18, 32 }
  0x5a   : > { %v232_v15 = vadd.f32 %v231_v13, %v225_v11  ;;  %p539_p0 = scmp.ne.s32.totalorder %s829_s18, %s538_s26  ;;  %p894_p3 = scmp.ne.s32.totalorder %s888_s22, 0 }
  0x5b   : > { %s630_s12 = smov [#allocation7]  }
  0x5c   : > { %v239_v17 = vadd.f32 %v238_v14, %v232_v15  ;;  %p540_p12 = pnand %p539_p0, %p894_p3  ;;  %s542_s16 = sshll.u32 %s630_s12, 4  ;;  %s543_s16 = int_to_ptr.vmem [resolvable:$false] %s542_s16 }
  0x5d   : > { %s544_s20 = scalar_lea.vmem %s543_s16, 64  ;;  %p545_p7 = scmp.lt.s32.totalorder %s829_s18, %s543_s16 }
  0x5e   : > { %v246_v18 = vadd.f32 %v245_v16, %v239_v17  ;;  %p541_p13 = pneg %p540_p12  ;;  %p546_p10 = scmp.lt.s32.totalorder %s544_s20, %s538_s26 }
  0x60   : > { %476 = vrsqrt.f32 %v246_v18  ;;  %vm249_vm0 = vcmp.eq.f32.partialorder %v246_v18, inf  ;;  %v252_v20 = vand.u32 2147483648, %v246_v18  ;;  %vm251_vm1 = vcmp.eq.f32.partialorder %v246_v18, 0.0  ;;  %p547_p9 = por %p546_p10, %p545_p7 }
  0x61   : > { %v255_v23 = vmul.f32 0.5, %v246_v18 }
  0x62   : > { %p548_p11 = pnand %p547_p9, %p541_p13 }
  0x6a   : > { %v477_v19 = vpop.eup %476 }
  0x6b   : > { %v248_v21 = vmul.f32 %v477_v19, %v246_v18 }
  0x6d   : > { %v250_v22 = vsel %vm249_vm0, %v246_v18, %v248_v21 }
  0x6e   : > { %v253_v24 = vsel %vm251_vm1, %v252_v20, %v250_v22 }
  0x6f   : > { %vm254_vm2 = vcmp.lt.f32.partialorder %v253_v24, 1.0  ;;  %v400_v25 = vadd.f32 -0.5, %v253_v24 }
  0x71   : > { %v257_v26 = vsel %vm254_vm2, %v255_v23, %v400_v25 }
  0x72   : > { %258 = vst [vmem:[%s221_s8] sm:$0x3] %v257_v26 }
  0x73   : > { %551 = shalt.err (!%p548_p11)
}
  0x74   : > { %s552_s27 = scalar_lea.hbm %s834_s3, 32  ;;  %s556_s29 = scalar_lea.hbm %s883_s2, 64 }
  0x75   : > { %p553_p1 = scmp.ne.s32.totalorder %s834_s3, %s552_s27  ;;  %p557_p5 = scmp.lt.u32.totalorder %s834_s3, %s883_s2 }
  0x76   : > { %p558_p4 = scmp.lt.u32.totalorder %s556_s29, %s552_s27  ;;  %p560_p0 = scmp.lt.u32.totalorder %s552_s27, %s834_s3 }
  0x77   : > { %p554_p6 = pnand %p553_p1, %p894_p3 }
  0x78   : > { %p559_p8 = por %p558_p4, %p557_p5 }
  0x79   : > { %p555_p2 = pneg %p554_p6 }
  0x7a   : > { %p561_p12 = por %p560_p0, %p559_p8 }
  0x7c   : > { %p562_p13 = pnand %p561_p12, %p555_p2 }
  0x7e   : > { %565 = shalt.err (!%p562_p13)
}
  0x7f   : > { %411 = dma.vmem_to_hbm [thread:$0]  (%p894_p3), %s829_s18, 32, %s834_s3, %s260_s15  }
  0x80 PF: > { %s286_s7 = sand.u32 1, %s604_s9   ;;  %p895_p7 = scmp.ne.s32.totalorder %s889_s24, 0 }
  0x81   : > { %p896_p10 = scmp.ge.s32.totalorder %s624_s14, 2  ;;  %s287_s21 = scalar_lea.sflag [#allocation4], %s286_s7 }
  0x83   : > { %p421_p9 = pnand %p896_p10, %p895_p7 }
  0x85   : > { %599 = dma.done.wait (!%p421_p9), %s287_s21, 32  }
  0x86   : > { %601 = vsyncadd (!%p421_p9), %s287_s21, 4294967264  ;;  %s21_s14 = sadd.s32 1, %s624_s14   ;;  %s897_s9 = smov %s608_s10 }
  0x87   : > { %p18_p11 = scmp.ge.s32.totalorder %s21_s14, 4   ;;  %s898_s10 = smov %s612_s11 }
  0x88   : > { %s899_s11 = smov %s702_s23  ;;  %s900_s12 = smov %s620_s13 }
  0x89   : > { %s901_s13 = smov %s903_s17  ;;  %20 = sbr.rel (!%p18_p11) target bundleno = 8 (0x8), region = 92 }
  0x90   :  { %292 = vsyncpa [#allocation3], 1 }
  0x91   :  { %294 = vsyncpa [#allocation3 + $0x1], 1 }
  0x92   :  { %295 = vsyncpa [#allocation6], 1 }
  0x93   :  { %297 = vsyncpa [#allocation6 + $0x1], 1 }
  0x94   :  { %298 = vsyncpa [#allocation4], 1 }
  0x95   :  { %300 = vsyncpa [#allocation4 + $0x1], 1 }

</bundles_post_ra>
